<compile_context>
chip_gen: v6e
topology: v6e:2x2x1
jax: 0.10.0
libtpu: 0.0.40
codegen_flags: <defaults>
</compile_context>

<pallas_src>
import jax
import jax.numpy as jnp
from jax.experimental import pallas as pl
from jax.experimental.pallas import tpu as pltpu


def _softplus(v):
    # Matches torch.nn.functional.softplus(v, beta=1, threshold=20):
    #   v > 20  -> v
    #   else    -> log(1 + exp(v))
    # The jnp.minimum guards the unselected branch against exp overflow.
    return jnp.where(v > 20.0, v, jnp.log1p(jnp.exp(jnp.minimum(v, 20.0))))


def sder_head_pos_kernel(x_ref, o_ref):
    # x_ref: (3, T) channel-major, lane-dense.  o_ref: (4, T).
    x = x_ref[...]
    gamma = _softplus(x[0:1, :])
    nu = _softplus(x[1:2, :])
    beta = _softplus(x[2:3, :])
    # Direct per-channel stores (no concatenate, no extra VMEM temporary).
    o_ref[0:1, :] = gamma
    o_ref[1:2, :] = nu
    o_ref[2:3, :] = nu + 1.0   # alpha
    o_ref[3:4, :] = beta


def sder_head_pos(x: jax.Array, *, block_t: int = 65536) -> jax.Array:
    """x: (b, 3) float32 -> (b, 4) float32."""
    b, c = x.shape
    assert c == 3, "SDERHeadPos expects 3 input channels"

    # Channel-major view: batch fills the 128-wide lane dimension.
    # (For very large b this one transpose is a single extra HBM pass; ideally
    #  the producer would emit channel-major directly.)
    xt = x.T  # (3, b)

    if b <= block_t:
        # Single grid step; block last dim equals the full array dim, which is
        # always a legal block shape regardless of 128-divisibility.
        t = b
        grid = (1,)
    else:
        t = block_t                      # multiple of 128
        grid = (pl.cdiv(b, t),)          # partial edge block is write-masked

    out_t = pl.pallas_call(
        sder_head_pos_kernel,
        out_shape=jax.ShapeDtypeStruct((4, b), x.dtype),
        grid_spec=pltpu.PrefetchScalarGridSpec(
            num_scalar_prefetch=0,
            grid=grid,
            in_specs=[pl.BlockSpec((3, t), lambda i: (0, i))],
            out_specs=pl.BlockSpec((4, t), lambda i: (0, i)),
        ),
        compiler_params=pltpu.CompilerParams(
            dimension_semantics=("parallel",),
        ),
    )(xt)
    return out_t.T  # (b, 4)


def sder_head_pos_ref(x: jax.Array) -> jax.Array:
    gamma = jax.nn.softplus(x[:, 0:1])
    nu = jax.nn.softplus(x[:, 1:2])
    alpha = nu + 1.0
    beta = jax.nn.softplus(x[:, 2:3])
    return jnp.concatenate((gamma, nu, alpha, beta), axis=1)


if __name__ == "__main__":
    key = jax.random.PRNGKey(0)
    b = 8
    x = jax.random.normal(key, (b, 3), dtype=jnp.float32) * 3.0

    out = sder_head_pos(x)
    out = jax.block_until_ready(out)

    ref = sder_head_pos_ref(x)
    assert out.shape == (b, 4), out.shape
    assert jnp.allclose(out, ref, atol=1e-5, rtol=1e-5), (out, ref)
    print("KERNEL_OK")
</pallas_src>

<mosaic_0001>
module attributes {stable_mosaic.version = 11 : i64} {
  func.func @sder_head_pos_kernel(%arg0: i32, %arg1: memref<3x8xf32, #tpu.memory_space<vmem>>, %arg2: memref<4x8xf32, #tpu.memory_space<vmem>>) attributes {dimension_semantics = [#tpu.dimension_semantics<parallel>], iteration_bounds = array<i64: 1>, scalar_prefetch = 0 : i64, scratch_operands = 0 : i64, tpu.core_type = #tpu.core_type<tc>, window_params = [{transform_indices = @transform_0, window_bounds = array<i64: 3, 8>}, {transform_indices = @transform_1, window_bounds = array<i64: 4, 8>}]} {
    %c0 = arith.constant 0 : index
    %c0_0 = arith.constant 0 : index
    %0 = vector.load %arg1[%c0, %c0_0] : memref<3x8xf32, #tpu.memory_space<vmem>>, vector<3x8xf32>
    %1 = vector.extract_strided_slice %0 {offsets = [0, 0], sizes = [1, 8], strides = [1, 1]} : vector<3x8xf32> to vector<1x8xf32>
    %cst = arith.constant 2.000000e+01 : f32
    %2 = vector.broadcast %cst : f32 to vector<1x8xf32>
    %3 = arith.cmpf ogt, %1, %2 : vector<1x8xf32>
    %cst_1 = arith.constant 2.000000e+01 : f32
    %4 = vector.broadcast %cst_1 : f32 to vector<1x8xf32>
    %5 = arith.minimumf %1, %4 : vector<1x8xf32>
    %6 = math.exp %5 : vector<1x8xf32>
    %7 = math.log1p %6 : vector<1x8xf32>
    %8 = arith.select %3, %1, %7 : vector<1x8xi1>, vector<1x8xf32>
    %9 = vector.extract_strided_slice %0 {offsets = [1, 0], sizes = [1, 8], strides = [1, 1]} : vector<3x8xf32> to vector<1x8xf32>
    %cst_2 = arith.constant 2.000000e+01 : f32
    %10 = vector.broadcast %cst_2 : f32 to vector<1x8xf32>
    %11 = arith.cmpf ogt, %9, %10 : vector<1x8xf32>
    %cst_3 = arith.constant 2.000000e+01 : f32
    %12 = vector.broadcast %cst_3 : f32 to vector<1x8xf32>
    %13 = arith.minimumf %9, %12 : vector<1x8xf32>
    %14 = math.exp %13 : vector<1x8xf32>
    %15 = math.log1p %14 : vector<1x8xf32>
    %16 = arith.select %11, %9, %15 : vector<1x8xi1>, vector<1x8xf32>
    %17 = vector.extract_strided_slice %0 {offsets = [2, 0], sizes = [1, 8], strides = [1, 1]} : vector<3x8xf32> to vector<1x8xf32>
    %cst_4 = arith.constant 2.000000e+01 : f32
    %18 = vector.broadcast %cst_4 : f32 to vector<1x8xf32>
    %19 = arith.cmpf ogt, %17, %18 : vector<1x8xf32>
    %cst_5 = arith.constant 2.000000e+01 : f32
    %20 = vector.broadcast %cst_5 : f32 to vector<1x8xf32>
    %21 = arith.minimumf %17, %20 : vector<1x8xf32>
    %22 = math.exp %21 : vector<1x8xf32>
    %23 = math.log1p %22 : vector<1x8xf32>
    %24 = arith.select %19, %17, %23 : vector<1x8xi1>, vector<1x8xf32>
    %c0_6 = arith.constant 0 : index
    %c0_7 = arith.constant 0 : index
    %25 = vector.load %arg2[%c0_6, %c0_7] : memref<4x8xf32, #tpu.memory_space<vmem>>, vector<1x8xf32>
    tpu.vector_store %arg2[%c0_6, %c0_7], %8 {strides = array<i32>} : memref<4x8xf32, #tpu.memory_space<vmem>>, vector<1x8xf32>,
    %c1 = arith.constant 1 : index
    %c0_8 = arith.constant 0 : index
    %26 = vector.load %arg2[%c1, %c0_8] : memref<4x8xf32, #tpu.memory_space<vmem>>, vector<1x8xf32>
    tpu.vector_store %arg2[%c1, %c0_8], %16 {strides = array<i32>} : memref<4x8xf32, #tpu.memory_space<vmem>>, vector<1x8xf32>,
    %cst_9 = arith.constant 1.000000e+00 : f32
    %27 = vector.broadcast %cst_9 : f32 to vector<1x8xf32>
    %28 = arith.addf %16, %27 : vector<1x8xf32>
    %c2 = arith.constant 2 : index
    %c0_10 = arith.constant 0 : index
    %29 = vector.load %arg2[%c2, %c0_10] : memref<4x8xf32, #tpu.memory_space<vmem>>, vector<1x8xf32>
    tpu.vector_store %arg2[%c2, %c0_10], %28 {strides = array<i32>} : memref<4x8xf32, #tpu.memory_space<vmem>>, vector<1x8xf32>,
    %c3 = arith.constant 3 : index
    %c0_11 = arith.constant 0 : index
    %30 = vector.load %arg2[%c3, %c0_11] : memref<4x8xf32, #tpu.memory_space<vmem>>, vector<1x8xf32>
    tpu.vector_store %arg2[%c3, %c0_11], %24 {strides = array<i32>} : memref<4x8xf32, #tpu.memory_space<vmem>>, vector<1x8xf32>,
    return
  }
  func.func @transform_0(%arg0: i32) -> (i32, i32) {
    %c0_i32 = arith.constant 0 : i32
    %c0_i32_0 = arith.constant 0 : i32
    return %c0_i32, %arg0 : i32, i32
  }
  func.func @transform_1(%arg0: i32) -> (i32, i32) {
    %c0_i32 = arith.constant 0 : i32
    %c0_i32_0 = arith.constant 0 : i32
    return %c0_i32, %arg0 : i32, i32
  }
}

</mosaic_0001>

<bundles_post_ra>
// kernel: tpu_custom_call.1
= control target key start
LH: loop header
LB: loop body
LE: loop exit
PB: predicated region body
PF: predicated region fallthrough
CT: control target
= control target key end

     0   :  { %6 = vsyncpa [#allocation3], 0  ;;  %s127_s0 = inlined_call_operand.hbm [shape: f32[3,8], index: 0, kind: input, shape index: {}]   ;;  %s128_s1 = inlined_call_operand.hbm [shape: f32[4,8], index: 1, kind: output, shape index: {}]  }
   0x1   :  { %7 = vsyncpa [#allocation4], 0  ;;  %s109_s6 = smov [#allocation2]  }
   0x2   :  { %s14_s7 = sshll.u32 %s109_s6, 4  ;;  %s15_s7 = int_to_ptr.vmem [resolvable:$true] %s14_s7 }
   0x3   :  { %s73_s8 = scalar_lea.vmem %s15_s7, 64  ;;  %p78_p1 = scmp.lt.s32.totalorder %s15_s7, %s15_s7 }
   0x4   :  { %p74_p0 = scmp.ne.s32.totalorder %s15_s7, %s73_s8  ;;  %p79_p2 = scmp.lt.s32.totalorder %s73_s8, %s73_s8 }
   0x6   :  { %p80_p3 = por %p79_p2, %p78_p1 }
   0x8   :  { %p81_p4 = pnand %p80_p3, %p74_p0 }
   0xa   :  { %84 = shalt.err (!%p81_p4)
}
   0xb   :  { %17 = dma.hbm_to_vmem [thread:$0]  %s127_s0, 64, %s15_s7, [#allocation3]  }
   0xc   :  { %105 = dma.done.wait [#allocation3], 64  }
   0xd   :  { %106 = vsyncadd [#allocation3], 4294967232  ;;  %v21_v0 = vld [vmem:[#allocation2] sm:$0x7]  ;;  %vm36_vm2 = vcmask 57344   ;;  %vm38_vm3 = vcmask 58369  }
   0xe   :  { %v23_v1 = vmin.f32 %v21_v0, 20.0  ;;  %vm22_vm1 = vcmp.gt.f32.partialorder %v21_v0, 20.0  ;;  %vm42_vm4 = vcmask 59394   ;;  %s110_s0 = smov [#allocation5]  }
   0xf   :  { %s50_s11 = sshll.u32 %s110_s0, 4  ;;  %s51_s11 = int_to_ptr.vmem [resolvable:$true] %s50_s11 }
  0x10   :  { %v24_v2 = vmul.f32 1.442695, %v23_v1  ;;  %s85_s12 = scalar_lea.vmem %s51_s11, 64  ;;  %p90_p6 = scmp.lt.s32.totalorder %s51_s11, %s51_s11 }
  0x11   :  { %p86_p5 = scmp.ne.s32.totalorder %s51_s11, %s85_s12  ;;  %p91_p7 = scmp.lt.s32.totalorder %s85_s12, %s85_s12 }
  0x12   :  { %61 = vpow2.f32 %v24_v2 }
  0x13   :  { %p92_p8 = por %p91_p7, %p90_p6 }
  0x15   :  { %p93_p9 = pnand %p92_p8, %p86_p5 }
  0x1f   :  { %v62_v3 = vpop.eup %61 }
  0x20   :  { %v26_v4 = vadd.f32 1.0, %v62_v3  ;;  %v29_v5 = vmul.f32 -0.5, %v62_v3  ;;  %v32_v7 = vand.u32 2147483647, %v62_v3 }
  0x22   :  { %63 = vlog2.f32 %v26_v4  ;;  %v30_v6 = vadd.f32 1.0, %v29_v5  ;;  %vm33_vm0 = vcmp.lt.f32.partialorder %v32_v7, 0.0004427343 }
  0x24   :  { %v31_v8 = vmul.f32 %v62_v3, %v30_v6 }
  0x2f   :  { %v64_v9 = vpop.eup %63 }
  0x30   :  { %v28_v10 = vmul.f32 0.6931472, %v64_v9 }
  0x32   :  { %v34_v11 = vsel %vm33_vm0, %v31_v8, %v28_v10 }
  0x33   :  { %v35_v12 = vsel %vm22_vm1, %v21_v0, %v34_v11 }
  0x34   :  { %37 = vst.msk [vmem:[#allocation5] sm:$0x1] %vm36_vm2, %v35_v12  ;;  %v40_v13 = vadd.f32 1.0, %v35_v12 }
  0x35   :  { %39 = vst.msk [vmem:[#allocation5] sm:$0x2] %vm38_vm3, %v35_v12 }
  0x36   :  { %43 = vst.msk [vmem:[#allocation5 + $0x1] sm:$0x4] %vm42_vm4, %v35_v12 }
  0x37   :  { %41 = vst.msk [vmem:[#allocation5 + $0x1] sm:$0x2] %vm38_vm3, %v40_v13 }
  0x38   :  { %96 = shalt.err (!%p93_p9)
}
  0x39   :  { %53 = dma.vmem_to_hbm [thread:$0]  %s51_s11, 64, %s128_s1, [#allocation4]  }
  0x3a   :  { %107 = dma.done.wait [#allocation4], 64  }
  0x3b   :  { %108 = vsyncadd [#allocation4], 4294967232 }
  0x3c   :  { %57 = vsyncpa [#allocation3], 1 }
  0x3d   :  { %58 = vsyncpa [#allocation4], 1 }

</bundles_post_ra>
